<compile_context>
chip_gen: v7x
topology: tpu7x:2x2x1
jax: 0.10.0
libtpu: 0.0.40
codegen_flags: <defaults>
</compile_context>

<pallas_src>
import jax
import jax.numpy as jnp
from jax.experimental import pallas as pl
from jax.experimental.pallas import tpu as pltpu


def rnn_fc_kernel(x_ref, w_big_ref, w_hh_ref, b_big_ref, w_fc_ref, b_fc_ref,
                  out_ref, xp_ref):
    Bb = x_ref.shape[0]
    H = w_hh_ref.shape[0]
    TH = b_big_ref.shape[1]
    T = TH // H

    # Input projection for ALL timesteps: one lane-dense bf16 MXU matmul,
    # entirely off the serial recurrence chain.  Result staged in VMEM so the
    # unrolled loop below only keeps h register-resident.
    xp_ref[...] = (jnp.dot(x_ref[...], w_big_ref[...],
                           preferred_element_type=jnp.float32)
                   + b_big_ref[...])                       # (Bb, T*H) f32

    # Hoisted loop-invariant load (the loop is unrolled at trace time).
    w_hh = w_hh_ref[...]                                   # (H, H) bf16

    # Recurrence: exactly one bf16 MXU pass per serial step; the per-step xp
    # read is a static lane sub-slice (cheap vld, vld slot has slack).
    h = jnp.zeros((Bb, H), jnp.float32)
    for t in range(T):
        h = jnp.tanh(jnp.dot(h.astype(w_hh.dtype), w_hh,
                             preferred_element_type=jnp.float32)
                     + xp_ref[:, t * H:(t + 1) * H])

    # Final linear on the last hidden state (== out[:, -1, :] in PyTorch).
    # TODO(synk): if O grows beyond 1, emit a lane-dense output layout
    # (e.g. (O, batch_block)) and transpose back in the wrapper.
    out_ref[...] = (jnp.dot(h.astype(w_fc_ref.dtype), w_fc_ref[...],
                            preferred_element_type=jnp.float32)
                    + b_fc_ref[...])                       # (Bb, O) f32


def _choose_batch_block(padded_b):
    # Single block by default: v5e/v6e have one TensorCore, so extra grid
    # steps are pure (~0.35 us/step) overhead.  For large batches split into
    # multiple-of-8, ~512-row blocks so the "parallel" grid axis can shard
    # across v7x's 2 TensorCores while keeping the MXU row dim saturated and
    # staying well inside v7x's 64 MiB VMEM with the packed x layout.
    if padded_b <= 512:
        return padded_b
    blk = 512
    while padded_b % blk != 0:
        blk -= 8
    return blk


def voltage_sensor_forward(x, params):
    """x: (B, T, I) float32 (PyTorch batch_first layout). Returns (B, O) f32."""
    B, T, I = x.shape
    H = params["w_hh"].shape[0]
    O = params["w_fc"].shape[1]

    # ---- wrapper-side layout prep (off the kernel's serial path) ----------
    # Pack the tiny feature dim into time: (B, T, I) -> (B, T*I), lane-dense.
    x2 = x.astype(jnp.float32).reshape(B, T * I)
    pad_b = -(-B // 8) * 8                                  # (8,128) sublane rule
    if pad_b != B:
        x2 = jnp.pad(x2, ((0, pad_b - B), (0, 0)))
    x2 = x2.astype(jnp.bfloat16)

    # Block-diagonal input weight: x_packed @ w_big == per-timestep x_t @ W_ih
    # landing in lanes [t*H:(t+1)*H].
    w_ih = params["w_ih"].astype(jnp.bfloat16)              # (I, H)
    w_big = jnp.zeros((T * I, T * H), jnp.bfloat16)
    for t in range(T):
        w_big = w_big.at[t * I:(t + 1) * I, t * H:(t + 1) * H].set(w_ih)
    b_big = jnp.tile(params["b"].astype(jnp.float32), (1, T))   # (1, T*H)

    w_hh = params["w_hh"].astype(jnp.bfloat16)
    w_fc = params["w_fc"].astype(jnp.bfloat16)
    b_fc = params["b_fc"].astype(jnp.float32)

    bb = _choose_batch_block(pad_b)
    n_blocks = pad_b // bb

    out = pl.pallas_call(
        rnn_fc_kernel,
        out_shape=jax.ShapeDtypeStruct((pad_b, O), jnp.float32),
        grid=(n_blocks,),
        in_specs=[
            pl.BlockSpec((bb, T * I), lambda i: (i, 0)),
            pl.BlockSpec((T * I, T * H), lambda i: (0, 0)),
            pl.BlockSpec((H, H), lambda i: (0, 0)),
            pl.BlockSpec((1, T * H), lambda i: (0, 0)),
            pl.BlockSpec((H, O), lambda i: (0, 0)),
            pl.BlockSpec((1, O), lambda i: (0, 0)),
        ],
        out_specs=pl.BlockSpec((bb, O), lambda i: (i, 0)),
        scratch_shapes=[pltpu.VMEM((bb, T * H), jnp.float32)],
        compiler_params=pltpu.CompilerParams(
            dimension_semantics=("parallel",)),
    )(x2, w_big, w_hh, b_big, w_fc, b_fc)

    return out[:B]                                           # drop padded rows


def init_params(key, input_size=3, hidden_size=16, output_size=1):
    """Deterministic init matching PyTorch default U(-1/sqrt(H), 1/sqrt(H))."""
    ks = jax.random.split(key, 7)
    bound = 1.0 / jnp.sqrt(jnp.float32(hidden_size))
    u = lambda k, shp: jax.random.uniform(k, shp, jnp.float32, -bound, bound)
    w_ih = u(ks[0], (input_size, hidden_size))       # weight_ih_l0.T
    w_hh = u(ks[1], (hidden_size, hidden_size))      # weight_hh_l0.T
    b_ih = u(ks[2], (1, hidden_size))
    b_hh = u(ks[3], (1, hidden_size))
    w_fc = u(ks[4], (hidden_size, output_size))      # fc.weight.T
    b_fc = u(ks[5], (1, output_size))
    return dict(w_ih=w_ih, w_hh=w_hh, b=b_ih + b_hh, w_fc=w_fc, b_fc=b_fc)


def reference_forward(x, params):
    """Pure-JAX f32 reference reproducing the PyTorch forward."""
    B, T, I = x.shape
    H = params["w_ih"].shape[1]
    h = jnp.zeros((B, H), jnp.float32)
    for t in range(T):
        h = jnp.tanh(x[:, t, :] @ params["w_ih"] + h @ params["w_hh"]
                     + params["b"])
    return h @ params["w_fc"] + params["b_fc"]


if __name__ == "__main__":
    key = jax.random.PRNGKey(0)
    k_x, k_p = jax.random.split(key)

    B, T, I, H, O = 4, 8, 3, 16, 1
    x = jax.random.normal(k_x, (B, T, I), jnp.float32)
    params = init_params(k_p, input_size=I, hidden_size=H, output_size=O)

    out = voltage_sensor_forward(x, params)
    out = jax.block_until_ready(out)

    ref = reference_forward(x, params)
    assert out.shape == (B, O)
    # bf16 MXU inputs over T=8 recurrent steps -> ~1e-2 relative tolerance.
    assert jnp.allclose(out, ref, atol=2e-2, rtol=2e-2)

    print("KERNEL_OK")
</pallas_src>

<mosaic_0001>
module attributes {stable_mosaic.version = 11 : i64} {
  func.func @rnn_fc_kernel(%arg0: i32, %arg1: memref<8x24xbf16, #tpu.memory_space<vmem>>, %arg2: memref<24x128xbf16, #tpu.memory_space<vmem>>, %arg3: memref<16x16xbf16, #tpu.memory_space<vmem>>, %arg4: memref<1x128xf32, #tpu.memory_space<vmem>>, %arg5: memref<16x1xbf16, #tpu.memory_space<vmem>>, %arg6: memref<1x1xf32, #tpu.memory_space<vmem>>, %arg7: memref<8x1xf32, #tpu.memory_space<vmem>>, %arg8: memref<8x128xf32, #tpu.memory_space<vmem>>) attributes {dimension_semantics = [#tpu.dimension_semantics<parallel>], iteration_bounds = array<i64: 1>, scalar_prefetch = 0 : i64, scratch_operands = 1 : i64, tpu.core_type = #tpu.core_type<tc>, window_params = [{transform_indices = @transform_0, window_bounds = array<i64: 8, 24>}, {pipeline_mode = #tpu.pipeline_mode<synchronous>, transform_indices = @transform_1, window_bounds = array<i64: 24, 128>}, {pipeline_mode = #tpu.pipeline_mode<synchronous>, transform_indices = @transform_2, window_bounds = array<i64: 16, 16>}, {pipeline_mode = #tpu.pipeline_mode<synchronous>, transform_indices = @transform_3, window_bounds = array<i64: 1, 128>}, {pipeline_mode = #tpu.pipeline_mode<synchronous>, transform_indices = @transform_4, window_bounds = array<i64: 16, 1>}, {pipeline_mode = #tpu.pipeline_mode<synchronous>, transform_indices = @transform_5, window_bounds = array<i64: 1, 1>}, {transform_indices = @transform_6, window_bounds = array<i64: 8, 1>}]} {
    %c0 = arith.constant 0 : index
    %c0_0 = arith.constant 0 : index
    %0 = vector.load %arg1[%c0, %c0_0] : memref<8x24xbf16, #tpu.memory_space<vmem>>, vector<8x24xbf16>
    %c0_1 = arith.constant 0 : index
    %c0_2 = arith.constant 0 : index
    %1 = vector.load %arg2[%c0_1, %c0_2] : memref<24x128xbf16, #tpu.memory_space<vmem>>, vector<24x128xbf16>
    %cst = arith.constant dense<0.000000e+00> : vector<8x128xf32>
    %2 = tpu.matmul %0, %1, %cst {dimension_numbers = #tpu.dot_dimension_numbers<[1], [0], [0], [1], [0, 0, 1, 1], [], []>} : vector<8x24xbf16>, vector<24x128xbf16>, vector<8x128xf32> -> vector<8x128xf32>
    %c0_3 = arith.constant 0 : index
    %c0_4 = arith.constant 0 : index
    %3 = vector.load %arg4[%c0_3, %c0_4] : memref<1x128xf32, #tpu.memory_space<vmem>>, vector<1x128xf32>
    %4 = vector.broadcast %3 : vector<1x128xf32> to vector<8x128xf32>
    %5 = arith.addf %2, %4 : vector<8x128xf32>
    %c0_5 = arith.constant 0 : index
    %c0_6 = arith.constant 0 : index
    %6 = vector.load %arg8[%c0_5, %c0_6] : memref<8x128xf32, #tpu.memory_space<vmem>>, vector<8x128xf32>
    tpu.vector_store %arg8[%c0_5, %c0_6], %5 {strides = array<i32>} : memref<8x128xf32, #tpu.memory_space<vmem>>, vector<8x128xf32>,
    %c0_7 = arith.constant 0 : index
    %c0_8 = arith.constant 0 : index
    %7 = vector.load %arg3[%c0_7, %c0_8] : memref<16x16xbf16, #tpu.memory_space<vmem>>, vector<16x16xbf16>
    %cst_9 = arith.constant 0.000000e+00 : f32
    %8 = vector.broadcast %cst_9 : f32 to vector<8x16xf32>
    %9 = arith.truncf %8 : vector<8x16xf32> to vector<8x16xbf16>
    %cst_10 = arith.constant dense<0.000000e+00> : vector<8x16xf32>
    %10 = tpu.matmul %9, %7, %cst_10 {dimension_numbers = #tpu.dot_dimension_numbers<[1], [0], [0], [1], [0, 0, 1, 1], [], []>} : vector<8x16xbf16>, vector<16x16xbf16>, vector<8x16xf32> -> vector<8x16xf32>
    %c0_11 = arith.constant 0 : index
    %c0_12 = arith.constant 0 : index
    %11 = vector.load %arg8[%c0_11, %c0_12] : memref<8x128xf32, #tpu.memory_space<vmem>>, vector<8x16xf32>
    %12 = arith.addf %10, %11 : vector<8x16xf32>
    %13 = math.tanh %12 : vector<8x16xf32>
    %14 = arith.truncf %13 : vector<8x16xf32> to vector<8x16xbf16>
    %cst_13 = arith.constant dense<0.000000e+00> : vector<8x16xf32>
    %15 = tpu.matmul %14, %7, %cst_13 {dimension_numbers = #tpu.dot_dimension_numbers<[1], [0], [0], [1], [0, 0, 1, 1], [], []>} : vector<8x16xbf16>, vector<16x16xbf16>, vector<8x16xf32> -> vector<8x16xf32>
    %c0_14 = arith.constant 0 : index
    %c16 = arith.constant 16 : index
    %16 = vector.load %arg8[%c0_14, %c16] : memref<8x128xf32, #tpu.memory_space<vmem>>, vector<8x16xf32>
    %17 = arith.addf %15, %16 : vector<8x16xf32>
    %18 = math.tanh %17 : vector<8x16xf32>
    %19 = arith.truncf %18 : vector<8x16xf32> to vector<8x16xbf16>
    %cst_15 = arith.constant dense<0.000000e+00> : vector<8x16xf32>
    %20 = tpu.matmul %19, %7, %cst_15 {dimension_numbers = #tpu.dot_dimension_numbers<[1], [0], [0], [1], [0, 0, 1, 1], [], []>} : vector<8x16xbf16>, vector<16x16xbf16>, vector<8x16xf32> -> vector<8x16xf32>
    %c0_16 = arith.constant 0 : index
    %c32 = arith.constant 32 : index
    %21 = vector.load %arg8[%c0_16, %c32] : memref<8x128xf32, #tpu.memory_space<vmem>>, vector<8x16xf32>
    %22 = arith.addf %20, %21 : vector<8x16xf32>
    %23 = math.tanh %22 : vector<8x16xf32>
    %24 = arith.truncf %23 : vector<8x16xf32> to vector<8x16xbf16>
    %cst_17 = arith.constant dense<0.000000e+00> : vector<8x16xf32>
    %25 = tpu.matmul %24, %7, %cst_17 {dimension_numbers = #tpu.dot_dimension_numbers<[1], [0], [0], [1], [0, 0, 1, 1], [], []>} : vector<8x16xbf16>, vector<16x16xbf16>, vector<8x16xf32> -> vector<8x16xf32>
    %c0_18 = arith.constant 0 : index
    %c48 = arith.constant 48 : index
    %26 = vector.load %arg8[%c0_18, %c48] : memref<8x128xf32, #tpu.memory_space<vmem>>, vector<8x16xf32>
    %27 = arith.addf %25, %26 : vector<8x16xf32>
    %28 = math.tanh %27 : vector<8x16xf32>
    %29 = arith.truncf %28 : vector<8x16xf32> to vector<8x16xbf16>
    %cst_19 = arith.constant dense<0.000000e+00> : vector<8x16xf32>
    %30 = tpu.matmul %29, %7, %cst_19 {dimension_numbers = #tpu.dot_dimension_numbers<[1], [0], [0], [1], [0, 0, 1, 1], [], []>} : vector<8x16xbf16>, vector<16x16xbf16>, vector<8x16xf32> -> vector<8x16xf32>
    %c0_20 = arith.constant 0 : index
    %c64 = arith.constant 64 : index
    %31 = vector.load %arg8[%c0_20, %c64] : memref<8x128xf32, #tpu.memory_space<vmem>>, vector<8x16xf32>
    %32 = arith.addf %30, %31 : vector<8x16xf32>
    %33 = math.tanh %32 : vector<8x16xf32>
    %34 = arith.truncf %33 : vector<8x16xf32> to vector<8x16xbf16>
    %cst_21 = arith.constant dense<0.000000e+00> : vector<8x16xf32>
    %35 = tpu.matmul %34, %7, %cst_21 {dimension_numbers = #tpu.dot_dimension_numbers<[1], [0], [0], [1], [0, 0, 1, 1], [], []>} : vector<8x16xbf16>, vector<16x16xbf16>, vector<8x16xf32> -> vector<8x16xf32>
    %c0_22 = arith.constant 0 : index
    %c80 = arith.constant 80 : index
    %36 = vector.load %arg8[%c0_22, %c80] : memref<8x128xf32, #tpu.memory_space<vmem>>, vector<8x16xf32>
    %37 = arith.addf %35, %36 : vector<8x16xf32>
    %38 = math.tanh %37 : vector<8x16xf32>
    %39 = arith.truncf %38 : vector<8x16xf32> to vector<8x16xbf16>
    %cst_23 = arith.constant dense<0.000000e+00> : vector<8x16xf32>
    %40 = tpu.matmul %39, %7, %cst_23 {dimension_numbers = #tpu.dot_dimension_numbers<[1], [0], [0], [1], [0, 0, 1, 1], [], []>} : vector<8x16xbf16>, vector<16x16xbf16>, vector<8x16xf32> -> vector<8x16xf32>
    %c0_24 = arith.constant 0 : index
    %c96 = arith.constant 96 : index
    %41 = vector.load %arg8[%c0_24, %c96] : memref<8x128xf32, #tpu.memory_space<vmem>>, vector<8x16xf32>
    %42 = arith.addf %40, %41 : vector<8x16xf32>
    %43 = math.tanh %42 : vector<8x16xf32>
    %44 = arith.truncf %43 : vector<8x16xf32> to vector<8x16xbf16>
    %cst_25 = arith.constant dense<0.000000e+00> : vector<8x16xf32>
    %45 = tpu.matmul %44, %7, %cst_25 {dimension_numbers = #tpu.dot_dimension_numbers<[1], [0], [0], [1], [0, 0, 1, 1], [], []>} : vector<8x16xbf16>, vector<16x16xbf16>, vector<8x16xf32> -> vector<8x16xf32>
    %c0_26 = arith.constant 0 : index
    %c112 = arith.constant 112 : index
    %46 = vector.load %arg8[%c0_26, %c112] : memref<8x128xf32, #tpu.memory_space<vmem>>, vector<8x16xf32>
    %47 = arith.addf %45, %46 : vector<8x16xf32>
    %48 = math.tanh %47 : vector<8x16xf32>
    %49 = arith.truncf %48 : vector<8x16xf32> to vector<8x16xbf16>
    %c0_27 = arith.constant 0 : index
    %c0_28 = arith.constant 0 : index
    %50 = vector.load %arg5[%c0_27, %c0_28] : memref<16x1xbf16, #tpu.memory_space<vmem>>, vector<16x1xbf16>
    %cst_29 = arith.constant dense<0.000000e+00> : vector<8x1xf32>
    %51 = tpu.matmul %49, %50, %cst_29 {dimension_numbers = #tpu.dot_dimension_numbers<[1], [0], [0], [1], [0, 0, 1, 1], [], []>} : vector<8x16xbf16>, vector<16x1xbf16>, vector<8x1xf32> -> vector<8x1xf32>
    %c0_30 = arith.constant 0 : index
    %c0_31 = arith.constant 0 : index
    %52 = vector.load %arg6[%c0_30, %c0_31] : memref<1x1xf32, #tpu.memory_space<vmem>>, vector<1x1xf32>
    %53 = vector.broadcast %52 : vector<1x1xf32> to vector<8x1xf32>
    %54 = arith.addf %51, %53 : vector<8x1xf32>
    %c0_32 = arith.constant 0 : index
    %c0_33 = arith.constant 0 : index
    %55 = vector.load %arg7[%c0_32, %c0_33] : memref<8x1xf32, #tpu.memory_space<vmem>>, vector<8x1xf32>
    tpu.vector_store %arg7[%c0_32, %c0_33], %54 {strides = array<i32>} : memref<8x1xf32, #tpu.memory_space<vmem>>, vector<8x1xf32>,
    return
  }
  func.func @transform_0(%arg0: i32) -> (i32, i32) {
    %c0_i32 = arith.constant 0 : i32
    %c0_i32_0 = arith.constant 0 : i32
    return %arg0, %c0_i32 : i32, i32
  }
  func.func @transform_1(%arg0: i32) -> (i32, i32) {
    %c0_i32 = arith.constant 0 : i32
    %c0_i32_0 = arith.constant 0 : i32
    %c0_i32_1 = arith.constant 0 : i32
    return %c0_i32, %c0_i32_0 : i32, i32
  }
  func.func @transform_2(%arg0: i32) -> (i32, i32) {
    %c0_i32 = arith.constant 0 : i32
    %c0_i32_0 = arith.constant 0 : i32
    %c0_i32_1 = arith.constant 0 : i32
    return %c0_i32, %c0_i32_0 : i32, i32
  }
  func.func @transform_3(%arg0: i32) -> (i32, i32) {
    %c0_i32 = arith.constant 0 : i32
    %c0_i32_0 = arith.constant 0 : i32
    %c0_i32_1 = arith.constant 0 : i32
    return %c0_i32, %c0_i32_0 : i32, i32
  }
  func.func @transform_4(%arg0: i32) -> (i32, i32) {
    %c0_i32 = arith.constant 0 : i32
    %c0_i32_0 = arith.constant 0 : i32
    %c0_i32_1 = arith.constant 0 : i32
    return %c0_i32, %c0_i32_0 : i32, i32
  }
  func.func @transform_5(%arg0: i32) -> (i32, i32) {
    %c0_i32 = arith.constant 0 : i32
    %c0_i32_0 = arith.constant 0 : i32
    %c0_i32_1 = arith.constant 0 : i32
    return %c0_i32, %c0_i32_0 : i32, i32
  }
  func.func @transform_6(%arg0: i32) -> (i32, i32) {
    %c0_i32 = arith.constant 0 : i32
    %c0_i32_0 = arith.constant 0 : i32
    return %arg0, %c0_i32 : i32, i32
  }
}

</mosaic_0001>

<bundles_post_ra>
// kernel: tpu_custom_call.1
= control target key start
LH: loop header
LB: loop body
LE: loop exit
PB: predicated region body
PF: predicated region fallthrough
CT: control target
= control target key end

     0   :  { %s845_s0 = inlined_call_operand.hbm [shape: bf16[8,24], index: 0, kind: input, shape index: {}]   ;;  %s846_s1 = inlined_call_operand.vmem [shape: bf16[24,128], index: 1, kind: input, shape index: {}]   ;;  %s847_s2 = inlined_call_operand.vmem [shape: bf16[16,16], index: 2, kind: input, shape index: {}]   ;;  %s848_s3 = inlined_call_operand.vmem [shape: f32[1,128], index: 3, kind: input, shape index: {}]   ;;  %s849_s4 = inlined_call_operand.vmem [shape: bf16[16,1], index: 4, kind: input, shape index: {}]   ;;  %s850_s5 = inlined_call_operand.<no memory space> [shape: f32[1,1], index: 5, kind: input, shape index: {}]   ;;  %s851_s6 = inlined_call_operand.vmem [shape: f32[8,1], index: 6, kind: output, shape index: {}]  }
   0x1   :  { %v11_v0 = vstv %s850_s5 }
   0x2   :  { %12 = vst [vmem:[#allocation3] sm:$0x1] %v11_v0 }
   0x3   :  { %13 = vsyncpa [#allocation5], 0  ;;  %s717_s23 = smov [#allocation4]   ;;  %s693_s27 = scalar_lea.hbm %s845_s0, 64 }
   0x4   :  { %s20_s24 = sshll.u32 %s717_s23, 4  ;;  %p694_p0 = scmp.ne.s32.totalorder %s845_s0, %s693_s27  ;;  %s21_s24 = int_to_ptr.vmem [resolvable:$true] %s20_s24 }
   0x5   :  { %p697_p1 = scmp.lt.u32.totalorder %s693_s27, %s845_s0 }
   0x7   :  { %p699_p2 = pnand %p697_p1, %p694_p0 }
   0x9   :  { %702 = shalt.err (!%p699_p2)
}
   0xa   :  { %s703_s5 = scalar_lea.vmem %s21_s24, 64  ;;  %p708_p4 = scmp.lt.s32.totalorder %s21_s24, %s21_s24 }
   0xb   :  { %p704_p3 = scmp.ne.s32.totalorder %s21_s24, %s703_s5  ;;  %p709_p5 = scmp.lt.s32.totalorder %s703_s5, %s703_s5 }
   0xd   :  { %p710_p6 = por %p709_p5, %p708_p4 }
   0xf   :  { %p711_p7 = pnand %p710_p6, %p704_p3 }
  0x11   :  { %714 = shalt.err (!%p711_p7)
}
  0x12   :  { %23 = dma.hbm_to_vmem [thread:$0]  %s845_s0, 64, %s21_s24, [#allocation5]  }
  0x13   :  { %715 = dma.done.wait [#allocation5], 64  }
  0x14   :  { %716 = vsyncadd [#allocation5], 4294967232  ;;  %v718_v1 = vmov 0.0   ;;  %vm719_vm0 = vmmov 0   ;;  %v673_v2 = vld [vmem:[%s846_s1] sm:$0xff]   ;;  %vm62_vm1 = vcmask 1043456  }
  0x15   :  { %600 = vmatprep.subr.bf16.mxu0 %v718_v1  ;;  %608 = vmatprep.subr.bf16.mxu1 %v718_v1  ;;  %v790_v3 = vld [vmem:[%s847_s2] sm:$0xff]   ;;  %v675_v4 = vld [vmem:[%s846_s1 + $0x8] ss:$0 sps:$4 sm:$0xff]   ;;  %v720_v6 = vmov 0   ;;  %vm58_vm2 = vcmask 195584   ;;  %s721_s15 = smov 80  }
  0x16   :  { %610 = vmatprep.mubr.msk.bf16.mxu1 %vm719_vm0, %v718_v1  ;;  %604 = vmatprep.mubr.msk.bf16.mxu0 %vm719_vm0, %v718_v1  ;;  %v64_v5 = vsel %vm62_vm1, %v675_v4, 0  ;;  %v38_v7 = vld [vmem:[#allocation4] sm:$0xf]  ;;  %v564_v9 = vld [vmem:[%s848_s3] ss:$0 sm:$0xff]  ;;  %s722_s16 = smov 112  }
  0x17   :  { %601 = vmatpush3.bf16.msra.mxu0 %v673_v2  ;;  %609 = vmatpush3.bf16.msra.mxu1 %v790_v3  ;;  %s723_s17 = smov 64   ;;  %s724_s18 = smov 96   ;;  %vm116_vm3 = vcmask 130048   ;;  %vm557_vm4 = vcmask 7168  }
  0x18   :  { %602 = vmatprep.subr.bf16.mxu0 %v718_v1  ;;  %614 = vmatprep.subr.bf16.mxu1 %v718_v1  ;;  %s725_s19 = smov 32   ;;  %s726_s3 = smov 48  }
  0x19   :  { %s727_s20 = smov 16  }
  0x1a   :  { %611 = vmatmul.mubr.bf16.vlgmr.msra.gmra.mrb[0].mxu1 %v720_v6  ;;  %v676_v6 = vld [vmem:[%s849_s4] sm:$0xff]  }
  0x1b   :  { %603 = vmatpush3.bf16.msra.mxu0 %v64_v5  ;;  %615 = vmatpush3.bf16.msra.mxu1 %v790_v3 }
  0x1c   :  { %616 = vmatprep.mubr.msk.bf16.mxu1 %vm719_vm0, %v718_v1  ;;  %620 = vmatprep.subr.bf16.mxu0 %v718_v1 }
  0x1d   :  { %626 = vmatprep.subr.bf16.mxu1 %v718_v1 }
  0x1e   :  { %605 = vmatmul.mubr.msk.bf16.vlgmr.msra.gmra.mrb[0].mxu0 %vm58_vm2, %v38_v7 }
  0x1f   :  { %621 = vmatpush3.bf16.msra.mxu0 %v790_v3  ;;  %622 = vmatprep.mubr.msk.bf16.mxu0 %vm719_vm0, %v718_v1 }
  0x20   :  { %632 = vmatprep.subr.bf16.mxu0 %v718_v1 }
  0xed   :  { %v154_v8 = vpop.f32.mrb[0].mxu1 }
  0xee   :  { %v612_v10 = vpop.f32.mrb[1].mxu1 }
  0xef   :  { %v157_v11 = vpop.f32.mrb[2].mxu1 }
  0xf0   :  { %v613_v13 = vpop.f32.mrb[3].mxu1 }
  0xf1   :  { %v100_v12 = vpop.f32.mrb[0].mxu0 }
  0xf2   :  { %v101_v14 = vadd.f32 %v564_v9, %v100_v12  ;;  %v606_v15 = vpop.f32.mrb[1].mxu0 }
  0xf3   :  { %v103_v16 = vpop.f32.mrb[2].mxu0 }
  0xf4   :  { %259 = vrot.lane.b32.xlu1 %v101_v14, %s721_s15  ;;  %163 = vrot.lane.b32.xlu0 %v101_v14, %s722_s16  ;;  %v607_v17 = vpop.f32.mrb[3].mxu0  ;;  %v155_v18 = vadd.f32 %v154_v8, %v101_v14 }
  0xf6   :  { %677 = vtanh.f32 %v155_v18 }
  0xf8   :  { %307 = vrot.lane.b32.xlu1 %v101_v14, %s723_s17  ;;  %211 = vrot.lane.b32.xlu0 %v101_v14, %s724_s18 }
  0xfc   :  { %403 = vrot.lane.b32.xlu1 %v101_v14, %s725_s19  ;;  %355 = vrot.lane.b32.xlu0 %v101_v14, %s726_s3 }
 0x100   :  { %v678_v19 = vpop.eup %677  ;;  %451 = vrot.lane.b32.xlu0 %v101_v14, %s727_s20  ;;  %v576_v14 = vld [vmem:[#allocation3] ss:$0 sm:$0xff] }
 0x101   :  { %v161_v20 = vpack.c.bf16 %v678_v19, %v678_v19 }
 0x103   :  { %617 = vmatmul.mubr.msk.bf16.vlgmr.msra.gmra.mrb[4].mxu1 %vm116_vm3, %v161_v20 }
 0x104   :  { %627 = vmatpush3.bf16.msra.mxu1 %v790_v3  ;;  %628 = vmatprep.mubr.msk.bf16.mxu1 %vm719_vm0, %v718_v1 }
 0x105   :  { %638 = vmatprep.subr.bf16.mxu1 %v718_v1 }
 0x166   :  { %v164_v21 = vpop.permute.xlu0 %163  ;;  %v260_v37 = vpop.permute.xlu1 %259 }
 0x16a   :  { %v212_v29 = vpop.permute.xlu0 %211  ;;  %v308_v45 = vpop.permute.xlu1 %307 }
 0x16e   :  { %v356_v53 = vpop.permute.xlu0 %355  ;;  %v404_v61 = vpop.permute.xlu1 %403 }
 0x172   :  { %v452_v7 = vpop.permute.xlu0 %451 }
 0x1d6   :  { %v203_v22 = vpop.f32.mrb[4].mxu1 }
 0x1d7   :  { %v204_v23 = vadd.f32 %v203_v22, %v164_v21  ;;  %v618_v24 = vpop.f32.mrb[5].mxu1 }
 0x1d8   :  { %v206_v25 = vpop.f32.mrb[6].mxu1 }
 0x1d9   :  { %679 = vtanh.f32 %v204_v23  ;;  %v619_v26 = vpop.f32.mrb[7].mxu1 }
 0x1e3   :  { %v680_v27 = vpop.eup %679 }
 0x1e4   :  { %v210_v28 = vpack.c.bf16 %v680_v27, %v680_v27 }
 0x1e6   :  { %623 = vmatmul.mubr.msk.bf16.vlgmr.msra.gmra.mrb[4].mxu0 %vm116_vm3, %v210_v28 }
 0x1e7   :  { %633 = vmatpush3.bf16.msra.mxu0 %v790_v3  ;;  %634 = vmatprep.mubr.msk.bf16.mxu0 %vm719_vm0, %v718_v1 }
 0x1e8   :  { %644 = vmatprep.subr.bf16.mxu0 %v718_v1 }
 0x2b9   :  { %v251_v30 = vpop.f32.mrb[4].mxu0 }
 0x2ba   :  { %v252_v31 = vadd.f32 %v251_v30, %v212_v29  ;;  %v624_v32 = vpop.f32.mrb[5].mxu0 }
 0x2bb   :  { %v254_v33 = vpop.f32.mrb[6].mxu0 }
 0x2bc   :  { %681 = vtanh.f32 %v252_v31  ;;  %v625_v34 = vpop.f32.mrb[7].mxu0 }
 0x2c6   :  { %v682_v35 = vpop.eup %681 }
 0x2c7   :  { %v258_v36 = vpack.c.bf16 %v682_v35, %v682_v35 }
 0x2c9   :  { %629 = vmatmul.mubr.msk.bf16.vlgmr.msra.gmra.mrb[8].mxu1 %vm116_vm3, %v258_v36 }
 0x2ca   :  { %639 = vmatpush3.bf16.msra.mxu1 %v790_v3  ;;  %640 = vmatprep.mubr.msk.bf16.mxu1 %vm719_vm0, %v718_v1 }
 0x2cb   :  { %650 = vmatprep.subr.bf16.mxu1 %v718_v1 }
 0x39c   :  { %v299_v38 = vpop.f32.mrb[8].mxu1 }
 0x39d   :  { %v300_v39 = vadd.f32 %v299_v38, %v260_v37  ;;  %v630_v40 = vpop.f32.mrb[9].mxu1 }
 0x39e   :  { %v302_v41 = vpop.f32.mrb[10].mxu1 }
 0x39f   :  { %683 = vtanh.f32 %v300_v39  ;;  %v631_v42 = vpop.f32.mrb[11].mxu1 }
 0x3a9   :  { %v684_v43 = vpop.eup %683 }
 0x3aa   :  { %v306_v44 = vpack.c.bf16 %v684_v43, %v684_v43 }
 0x3ac   :  { %635 = vmatmul.mubr.msk.bf16.vlgmr.msra.gmra.mrb[8].mxu0 %vm116_vm3, %v306_v44 }
 0x3ad   :  { %645 = vmatpush3.bf16.msra.mxu0 %v790_v3  ;;  %646 = vmatprep.mubr.msk.bf16.mxu0 %vm719_vm0, %v718_v1 }
 0x3ae   :  { %656 = vmatprep.subr.bf16.mxu0 %v718_v1 }
 0x47f   :  { %v347_v46 = vpop.f32.mrb[8].mxu0 }
 0x480   :  { %v348_v47 = vadd.f32 %v347_v46, %v308_v45  ;;  %v636_v48 = vpop.f32.mrb[9].mxu0 }
 0x481   :  { %v350_v49 = vpop.f32.mrb[10].mxu0 }
 0x482   :  { %685 = vtanh.f32 %v348_v47  ;;  %v637_v50 = vpop.f32.mrb[11].mxu0 }
 0x48c   :  { %v686_v51 = vpop.eup %685 }
 0x48d   :  { %v354_v52 = vpack.c.bf16 %v686_v51, %v686_v51 }
 0x48f   :  { %641 = vmatmul.mubr.msk.bf16.vlgmr.msra.gmra.mrb[12].mxu1 %vm116_vm3, %v354_v52 }
 0x490   :  { %651 = vmatpush3.bf16.msra.mxu1 %v790_v3  ;;  %652 = vmatprep.mubr.msk.bf16.mxu1 %vm719_vm0, %v718_v1 }
 0x562   :  { %v395_v54 = vpop.f32.mrb[12].mxu1 }
 0x563   :  { %v396_v55 = vadd.f32 %v395_v54, %v356_v53  ;;  %v642_v56 = vpop.f32.mrb[13].mxu1 }
 0x564   :  { %v398_v57 = vpop.f32.mrb[14].mxu1 }
 0x565   :  { %687 = vtanh.f32 %v396_v55  ;;  %v643_v58 = vpop.f32.mrb[15].mxu1 }
 0x56f   :  { %v688_v59 = vpop.eup %687 }
 0x570   :  { %v402_v60 = vpack.c.bf16 %v688_v59, %v688_v59 }
 0x572   :  { %647 = vmatmul.mubr.msk.bf16.vlgmr.msra.gmra.mrb[12].mxu0 %vm116_vm3, %v402_v60 }
 0x573   :  { %658 = vmatprep.mubr.msk.bf16.mxu0 %vm719_vm0, %v718_v1  ;;  %657 = vmatpush3.bf16.msra.mxu0 %v676_v6 }
 0x645   :  { %v443_v62 = vpop.f32.mrb[12].mxu0 }
 0x646   :  { %v444_v63 = vadd.f32 %v443_v62, %v404_v61  ;;  %v648_v0 = vpop.f32.mrb[13].mxu0 }
 0x647   :  { %v446_v2 = vpop.f32.mrb[14].mxu0 }
 0x648   :  { %689 = vtanh.f32 %v444_v63  ;;  %v649_v3 = vpop.f32.mrb[15].mxu0 }
 0x652   :  { %v690_v4 = vpop.eup %689 }
 0x653   :  { %v450_v5 = vpack.c.bf16 %v690_v4, %v690_v4 }
 0x655   :  { %653 = vmatmul.mubr.msk.bf16.vlgmr.msra.gmra.mrb[16].mxu1 %vm116_vm3, %v450_v5 }
 0x728   :  { %v491_v8 = vpop.f32.mrb[16].mxu1 }
 0x729   :  { %v492_v9 = vadd.f32 %v491_v8, %v452_v7  ;;  %v654_v1 = vpop.f32.mrb[17].mxu1 }
 0x72a   :  { %v494_v10 = vpop.f32.mrb[18].mxu1 }
 0x72b   :  { %691 = vtanh.f32 %v492_v9  ;;  %v655_v11 = vpop.f32.mrb[19].mxu1 }
 0x735   :  { %v692_v12 = vpop.eup %691 }
 0x736   :  { %v498_v13 = vpack.c.bf16 %v692_v12, %v692_v12 }
 0x738   :  { %659 = vmatmul.mubr.msk.bf16.vlgmr.msra.gmra.mrb[16].mxu0 %vm116_vm3, %v498_v13 }
 0x80b   :  { %v551_v15 = vpop.f32.mrb[16].mxu0 }
 0x80c   :  { %v552_v16 = vadd.f32 %v576_v14, %v551_v15  ;;  %v660_v17 = vpop.f32.mrb[17].mxu0 }
 0x80d   :  { %v554_v18 = vpop.f32.mrb[18].mxu0 }
 0x80e   :  { %558 = vst.msk [vmem:[%s851_s6] sm:$0xff] %vm557_vm4, %v552_v16  ;;  %v661_v19 = vpop.f32.mrb[19].mxu0 }
 0x80f   :  { %563 = vsyncpa [#allocation5], 1 }

</bundles_post_ra>
